<compile_context>
chip_gen: v7x
topology: tpu7x:2x2x1
jax: 0.10.0
libtpu: 0.0.40
codegen_flags: <defaults>
</compile_context>

<pallas_src>
import numpy as np
import jax
import jax.numpy as jnp
from jax.experimental import pallas as pl
from jax.experimental.pallas import tpu as pltpu

# ---------------- sizes (small, consistent with the module) -----------------
C, H, W = 3, 16, 16        # image NCHW
IMG_FLAT = C * H * W       # 768  (= 6 * 128, lane dense)
SEQ, WORD = 8, 16          # instruction: (1, SEQ, WORD) pre-embedded tokens
IMG_EMB = 32
TEXT_EMB = 32
DIR_EMB = 8                # previous_action_module embedding size
BLK_EMB = 8                # previous_block_module embedding size
IN_EMB = IMG_EMB + TEXT_EMB + DIR_EMB + BLK_EMB   # input_embedding_size = 80
HID = 64                   # output_hidden_size
N_BLOCKS = 20              # blocks_hidden_size
N_DIR = 5                  # directions_hidden_size (4 directions + stop)
N_ACT = N_BLOCKS * 4 + 1   # 81
DIR_VOCAB = 6
BLK_VOCAB = 21
LANES = 128
TEXT_LANE = 32             # text embedding lives at lanes 32:64 of the state row

# --------------- packed parameter buffer layout (rows x 128 lanes) -----------
R_WTXT = 0          # (WORD, 128)  w_txt at lanes 32:64          rows   0..16
R_WF = 16           # (HID, HID)   rows 0:32 wf_img, 32:64 wf_txt rows 16..80
R_WBD = 80          # (HID, 32)    lanes 0:20 w_b, 20:25 w_d      rows 80..144
R_SEL = 144         # (32, 128)    rows 0:20 sel_b, 20:25 sel_d   rows 144..176
R_BIAS = 176        # row 176: b_txt (lanes 32:64); row 177: [b_b | b_d]
R_COMB = 184        # (126, HID)   combined dir/blk/bias table    rows 184..312
PACK_ROWS = 312     # multiple of 8
ATOL = 2e-3         # MXU f32 matmul pass precision bounds this; see review note


# ------------------------------- kernel -------------------------------------
def _emnlp_kernel(meta_ref,     # SMEM (1+2T,) int32: [has_init, dir_0, blk_0, dir_1, blk_1, ...]
                  img_ref,      # VMEM (8, IMG_FLAT)   per-step (row 0 = flattened image)
                  aux_ref,      # VMEM (16, 128)       resident: rows 0:8 instr, row 8 init state
                  w_img_ref,    # VMEM (HID, IMG_FLAT) resident: transposed image weight (rows 32:64 zero)
                  p_ref,        # VMEM (PACK_ROWS, 128) resident packed params/constants
                  out_ref,      # VMEM (8, 128)        per-step: row 0 action logprob, row 1 state
                  state_sc):    # VMEM (1, 128) scratch: carried text embedding (lanes 32:64)
    f32 = jnp.float32
    t = pl.program_id(0)

    # ---- model state (text module only on step 0, per `model_state is None`) ----
    @pl.when(t == 0)
    def _init_state():
        @pl.when(meta_ref[0] == 0)
        def _():   # model_state is None -> run text module: mean over seq + Linear
            instr_mean = jnp.mean(aux_ref[0:SEQ, 0:WORD], axis=0, keepdims=True)  # (1, WORD)
            state_sc[...] = (jnp.dot(instr_mean, p_ref[R_WTXT:R_WTXT + WORD, :],
                                     preferred_element_type=f32)
                             + p_ref[R_BIAS:R_BIAS + 1, :])                        # text at lanes 32:64

        @pl.when(meta_ref[0] != 0)
        def _():   # model_state provided -> load it (row SEQ of aux, lanes 32:64)
            state_sc[...] = aux_ref[SEQ:SEQ + 1, :]

    state_row = state_sc[...]                                                      # (1, 128)

    # ---- previous action / block: ONE dynamic row of the combined table ----
    dir_id = jnp.clip(meta_ref[1 + 2 * t], 0, DIR_VOCAB - 1)
    blk_id = jnp.clip(meta_ref[2 + 2 * t], 0, BLK_VOCAB - 1)
    comb_row = p_ref[pl.ds(R_COMB + dir_id * BLK_VOCAB + blk_id, 1), 0:HID]        # (1, HID)

    # ---- image module: trans_b dot on the lane-dense weight (no relayout) ----
    img_part = jax.lax.dot_general(img_ref[0:1, :], w_img_ref[...],
                                   (((1,), (1,)), ((), ())),
                                   preferred_element_type=f32)                     # (1, 64): lanes 0:32 img emb
    pre64 = img_part + state_row[:, 0:HID]                                         # lanes 32:64 = text emb

    # ---- final_embedder: single (1,64)@(64,64) dot + ReLU -------------------
    h1 = jnp.maximum(jnp.dot(pre64, p_ref[R_WF:R_WF + HID, 0:HID],
                             preferred_element_type=f32) + comb_row, 0.0)          # (1, HID)

    # ---- blocks + directions heads fused into one dot -----------------------
    logits = (jnp.dot(h1, p_ref[R_WBD:R_WBD + HID, 0:32], preferred_element_type=f32)
              + p_ref[R_BIAS + 1:R_BIAS + 2, 0:32])                                # lanes 0:20 blk, 20:25 dir

    lane = jax.lax.broadcasted_iota(jnp.int32, (1, 32), 1)
    is_b = lane < N_BLOCKS
    is_d = jnp.logical_and(lane >= N_BLOCKS, lane < N_BLOCKS + N_DIR)
    neg = jnp.float32(-1e30)
    zb = jnp.where(is_b, logits, neg)
    zd = jnp.where(is_d, logits, neg)
    max_b = jnp.max(zb, axis=-1, keepdims=True)
    max_d = jnp.max(zd, axis=-1, keepdims=True)
    lse_b = max_b + jnp.log(jnp.sum(jnp.exp(zb - max_b), axis=-1, keepdims=True))
    lse_d = max_d + jnp.log(jnp.sum(jnp.exp(zd - max_d), axis=-1, keepdims=True))
    lp = logits - jnp.where(is_b, lse_b, lse_d)    # (1,32); lanes >= 25 finite garbage, zeroed by sel

    # ---- action assembly: one dot against the stacked constant selection ----
    act = jnp.dot(lp, p_ref[R_SEL:R_SEL + 32, :], preferred_element_type=f32)      # (1, 128) lane dense

    out_ref[0:1, :] = act          # lanes 0:N_ACT valid
    out_ref[1:2, :] = state_row    # lanes 32:64 = new_model_state


# ------------------------------ parameters ----------------------------------
def _uniform_linear(key, fan_in, fan_out):
    # matches weights_init: U(-sqrt(6/(fan_in+fan_out)), +...), bias = 0
    bound = (6.0 / (fan_in + fan_out)) ** 0.5
    w = jax.random.uniform(key, (fan_in, fan_out), jnp.float32, -bound, bound)
    b = jnp.zeros((1, fan_out), jnp.float32)
    return w, b


def init_params(key):
    ks = jax.random.split(key, 8)
    w_img, b_img = _uniform_linear(ks[0], IMG_FLAT, IMG_EMB)
    w_txt, b_txt = _uniform_linear(ks[1], WORD, TEXT_EMB)
    w_f, b_f = _uniform_linear(ks[2], IN_EMB, HID)
    w_b, b_b = _uniform_linear(ks[3], HID, N_BLOCKS)
    w_d, b_d = _uniform_linear(ks[4], HID, N_DIR)
    dir_table = 0.1 * jax.random.normal(ks[5], (DIR_VOCAB, DIR_EMB), jnp.float32)
    blk_table = 0.1 * jax.random.normal(ks[6], (BLK_VOCAB, BLK_EMB), jnp.float32)
    return dict(w_img=w_img, b_img=b_img, w_txt=w_txt, b_txt=b_txt,
                w_f=w_f, b_f=b_f, w_b=w_b, b_b=b_b, w_d=w_d, b_d=b_d,
                dir_table=dir_table, blk_table=blk_table)


def _build_sel_matrices():
    k = np.arange(N_ACT)[None, :]
    i = np.arange(N_BLOCKS)[:, None]
    sel_b = ((k < N_BLOCKS * 4) & ((k // 4) == i)).astype(np.float32)        # (20, 81)
    j = np.arange(N_DIR)[:, None]
    sel_d = (((k < N_BLOCKS * 4) & ((k % 4) == j))
             | ((k == N_BLOCKS * 4) & (j == 4))).astype(np.float32)          # (5, 81)
    return sel_b, sel_d


def pack_params(params):
    """Host-side, done ONCE: pack all small params + constants into two buffers."""
    w_f = np.asarray(params["w_f"])                                          # (80, 64)
    wf_img = w_f[:IMG_EMB]
    wf_txt = w_f[IMG_EMB:IMG_EMB + TEXT_EMB]
    wf_dir = w_f[IMG_EMB + TEXT_EMB:IMG_EMB + TEXT_EMB + DIR_EMB]
    wf_blk = w_f[IMG_EMB + TEXT_EMB + DIR_EMB:]

    # lane-dense transposed image weight, zero-padded to HID rows so the image
    # embedding lands in lanes 0:32 of the (1, 64) pre-activation vector.
    w_img_t64 = np.zeros((HID, IMG_FLAT), np.float32)
    w_img_t64[:IMG_EMB] = np.asarray(params["w_img"]).T

    # combined dir/blk table: one dynamic row load replaces two embedding
    # lookups, two final_embedder dots, b_f and the (delayed) b_img term.
    dir_c = np.asarray(params["dir_table"]) @ wf_dir                          # (6, 64)
    blk_c = np.asarray(params["blk_table"]) @ wf_blk                          # (21, 64)
    b_imgf = np.asarray(params["b_img"]).reshape(1, -1) @ wf_img              # (1, 64)
    comb = (dir_c[:, None, :] + blk_c[None, :, :]
            + np.asarray(params["b_f"]).reshape(1, 1, -1)
            + b_imgf.reshape(1, 1, -1)).reshape(DIR_VOCAB * BLK_VOCAB, HID)

    sel_b, sel_d = _build_sel_matrices()

    packed = np.zeros((PACK_ROWS, LANES), np.float32)
    packed[R_WTXT:R_WTXT + WORD, TEXT_LANE:TEXT_LANE + TEXT_EMB] = np.asarray(params["w_txt"])
    packed[R_WF:R_WF + IMG_EMB, :HID] = wf_img
    packed[R_WF + IMG_EMB:R_WF + HID, :HID] = wf_txt
    packed[R_WBD:R_WBD + HID, :N_BLOCKS] = np.asarray(params["w_b"])
    packed[R_WBD:R_WBD + HID, N_BLOCKS:N_BLOCKS + N_DIR] = np.asarray(params["w_d"])
    packed[R_SEL:R_SEL + N_BLOCKS, :N_ACT] = sel_b
    packed[R_SEL + N_BLOCKS:R_SEL + N_BLOCKS + N_DIR, :N_ACT] = sel_d
    packed[R_BIAS, TEXT_LANE:TEXT_LANE + TEXT_EMB] = np.asarray(params["b_txt"]).reshape(-1)
    packed[R_BIAS + 1, :N_BLOCKS] = np.asarray(params["b_b"]).reshape(-1)
    packed[R_BIAS + 1, N_BLOCKS:N_BLOCKS + N_DIR] = np.asarray(params["b_d"]).reshape(-1)
    packed[R_COMB:R_COMB + DIR_VOCAB * BLK_VOCAB, :HID] = comb

    return dict(packed=jnp.asarray(packed), w_img_t64=jnp.asarray(w_img_t64))


# ------------------------------ pallas call ----------------------------------
def _make_call(T):
    grid_spec = pltpu.PrefetchScalarGridSpec(
        num_scalar_prefetch=1,                       # meta scalars -> SMEM
        grid=(T,),
        in_specs=[
            pl.BlockSpec((8, IMG_FLAT), lambda t, m: (t, 0)),        # per-step image block
            pl.BlockSpec((16, LANES), lambda t, m: (0, 0)),          # aux (resident)
            pl.BlockSpec((HID, IMG_FLAT), lambda t, m: (0, 0)),      # image weight (resident)
            pl.BlockSpec((PACK_ROWS, LANES), lambda t, m: (0, 0)),   # packed params (resident)
        ],
        out_specs=pl.BlockSpec((8, LANES), lambda t, m: (t, 0)),     # per-step output block
        scratch_shapes=[pltpu.VMEM((1, LANES), jnp.float32)],        # carried model state
    )
    return pl.pallas_call(
        _emnlp_kernel,
        grid_spec=grid_spec,
        out_shape=jax.ShapeDtypeStruct((T * 8, LANES), jnp.float32),
        compiler_params=pltpu.CompilerParams(
            dimension_semantics=("arbitrary",)),      # state is carried step -> step
    )


@jax.jit
def _emnlp_steps(meta, images_flat, instr, init_state, w_img_t64, packed_buf):
    T = images_flat.shape[0]
    img_slab = jnp.pad(images_flat[:, None, :], ((0, 0), (0, 7), (0, 0))
                       ).reshape(T * 8, IMG_FLAT)                     # row 0 of each 8-row block
    aux = jnp.zeros((16, LANES), jnp.float32)
    aux = aux.at[0:SEQ, 0:WORD].set(instr)
    aux = aux.at[SEQ, TEXT_LANE:TEXT_LANE + TEXT_EMB].set(init_state)
    out = _make_call(T)(meta, img_slab, aux, w_img_t64, packed_buf).reshape(T, 8, LANES)
    act_lp = out[:, 0, :N_ACT]                                        # (T, 81)
    new_state = out[T - 1, 1, TEXT_LANE:TEXT_LANE + TEXT_EMB][None, :]  # (1, 32)
    return act_lp, new_state


def emnlp_forward_steps(packed, images, instruction, prev_block_ids,
                        prev_direction_ids, model_state=None):
    """Run T incremental steps in one kernel launch. images: (T, C, H, W)."""
    T = images.shape[0]
    images_flat = images.reshape(T, -1).astype(jnp.float32)
    instr = instruction[0].astype(jnp.float32)                        # (SEQ, WORD)
    dir_ids = jnp.asarray(prev_direction_ids, jnp.int32).reshape(-1)
    blk_ids = jnp.asarray(prev_block_ids, jnp.int32).reshape(-1)
    if model_state is None:
        flag = jnp.zeros((1,), jnp.int32)
        init_state = jnp.zeros((TEXT_EMB,), jnp.float32)
    else:
        flag = jnp.ones((1,), jnp.int32)
        init_state = jnp.asarray(model_state, jnp.float32).reshape(-1)
    meta = jnp.concatenate([flag, jnp.stack([dir_ids, blk_ids], axis=1).reshape(-1)])
    return _emnlp_steps(meta, images_flat, instr, init_state,
                        packed["w_img_t64"], packed["packed"])


def emnlp_forward(packed, images, instruction, prev_block_id_batch,
                  prev_direction_id_batch, model_state=None):
    """Single-step API matching the original forward (batch == 1)."""
    assert images.shape[0] == 1, "incremental module assumes batch == 1"
    return emnlp_forward_steps(packed, images, instruction, prev_block_id_batch,
                               prev_direction_id_batch, model_state)


# --------------------------- pure-JAX reference ------------------------------
def emnlp_reference(params, images, instruction, prev_block_id_batch,
                    prev_direction_id_batch, model_state=None):
    img_emb = images.reshape(1, -1) @ params["w_img"] + params["b_img"]
    if model_state is None:
        text_emb = (jnp.mean(instruction[0], axis=0, keepdims=True)
                    @ params["w_txt"] + params["b_txt"])
    else:
        text_emb = model_state
    dir_emb = params["dir_table"][prev_direction_id_batch].reshape(1, DIR_EMB)
    blk_emb = params["blk_table"][prev_block_id_batch].reshape(1, BLK_EMB)
    action_emb = jnp.concatenate([dir_emb, blk_emb], axis=1)
    pre_h1 = jnp.concatenate([img_emb, text_emb, action_emb], axis=1)
    h1 = jax.nn.relu(pre_h1 @ params["w_f"] + params["b_f"])
    block_lp = jax.nn.log_softmax(h1 @ params["w_b"] + params["b_b"], axis=1)
    dir_lp = jax.nn.log_softmax(h1 @ params["w_d"] + params["b_d"], axis=1)
    action_lp = (block_lp.T + dir_lp[:, :4]).reshape(1, -1)
    return jnp.concatenate([action_lp, dir_lp[:, 4:5]], axis=1), text_emb


# ------------------------------- main ----------------------------------------
if __name__ == "__main__":
    key = jax.random.PRNGKey(0)
    pk, ik, tk = jax.random.split(key, 3)
    params = init_params(pk)
    packed = pack_params(params)          # once, outside the decode loop

    T = 4
    images = jax.random.normal(ik, (T, C, H, W), jnp.float32)
    instruction = jax.random.normal(tk, (1, SEQ, WORD), jnp.float32)
    prev_block_ids = jnp.array([3, 7, 0, 19], dtype=jnp.int32)
    prev_direction_ids = jnp.array([1, 0, 4, 2], dtype=jnp.int32)

    # whole rollout in one launch: step 0 computes the text embedding
    # (model_state is None), later steps reuse the carried state.
    act_lp, new_state = emnlp_forward_steps(packed, images, instruction,
                                            prev_block_ids, prev_direction_ids,
                                            model_state=None)
    jax.block_until_ready((act_lp, new_state))
    assert act_lp.shape == (T, N_ACT) and new_state.shape == (1, TEXT_EMB)

    # step-by-step pure-JAX reference of the PyTorch forward
    state = None
    for t in range(T):
        ref_act, state = emnlp_reference(params, images[t:t + 1], instruction,
                                         prev_block_ids[t:t + 1],
                                         prev_direction_ids[t:t + 1],
                                         model_state=state)
        assert jnp.allclose(act_lp[t], ref_act[0], atol=ATOL, rtol=ATOL), \
            f"step {t} action_logprob mismatch"
    assert jnp.allclose(new_state, state, atol=ATOL, rtol=ATOL), "model_state mismatch"

    # single step with an externally provided model_state (exercises the flag path)
    act2, st2 = emnlp_forward(packed, images[:1], instruction,
                              prev_block_ids[:1], prev_direction_ids[:1],
                              model_state=new_state)
    jax.block_until_ready((act2, st2))
    ref_act2, ref_st2 = emnlp_reference(params, images[:1], instruction,
                                        prev_block_ids[:1], prev_direction_ids[:1],
                                        model_state=state)
    assert jnp.allclose(act2[0], ref_act2[0], atol=ATOL, rtol=ATOL), "flag-path action mismatch"
    assert jnp.allclose(st2, ref_st2, atol=ATOL, rtol=ATOL), "flag-path state mismatch"

    print("KERNEL_OK")
</pallas_src>

<mosaic_0001>
module attributes {stable_mosaic.version = 11 : i64} {
  func.func @_emnlp_kernel(%arg0: i32, %arg1: memref<9xi32, #tpu.memory_space<smem>>, %arg2: memref<8x768xf32, #tpu.memory_space<vmem>>, %arg3: memref<16x128xf32, #tpu.memory_space<vmem>>, %arg4: memref<64x768xf32, #tpu.memory_space<vmem>>, %arg5: memref<312x128xf32, #tpu.memory_space<vmem>>, %arg6: memref<8x128xf32, #tpu.memory_space<vmem>>, %arg7: memref<1x128xf32, #tpu.memory_space<vmem>>) attributes {dimension_semantics = [#tpu.dimension_semantics<arbitrary>], iteration_bounds = array<i64: 4>, scalar_prefetch = 1 : i64, scratch_operands = 1 : i64, tpu.core_type = #tpu.core_type<tc>, window_params = [{transform_indices = @transform_0, window_bounds = array<i64: 8, 768>}, {pipeline_mode = #tpu.pipeline_mode<synchronous>, transform_indices = @transform_1, window_bounds = array<i64: 16, 128>}, {pipeline_mode = #tpu.pipeline_mode<synchronous>, transform_indices = @transform_2, window_bounds = array<i64: 64, 768>}, {pipeline_mode = #tpu.pipeline_mode<synchronous>, transform_indices = @transform_3, window_bounds = array<i64: 312, 128>}, {transform_indices = @transform_4, window_bounds = array<i64: 8, 128>}]} {
    %c0_i32 = arith.constant 0 : i32
    %0 = arith.cmpi eq, %arg0, %c0_i32 : i32
    %1 = arith.extui %0 : i1 to i32
    %c0_i32_0 = arith.constant 0 : i32
    %2 = arith.cmpi ne, %1, %c0_i32_0 : i32
    scf.if %2 {
      %c0_30 = arith.constant 0 : index
      %75 = memref.load %arg1[%c0_30] : memref<9xi32, #tpu.memory_space<smem>>
      %c0_i32_31 = arith.constant 0 : i32
      %76 = arith.cmpi eq, %75, %c0_i32_31 : i32
      %77 = arith.extui %76 : i1 to i32
      %c0_i32_32 = arith.constant 0 : i32
      %78 = arith.cmpi ne, %77, %c0_i32_32 : i32
      scf.if %78 {
        %c0_36 = arith.constant 0 : index
        %c0_37 = arith.constant 0 : index
        %83 = vector.load %arg3[%c0_36, %c0_37] : memref<16x128xf32, #tpu.memory_space<vmem>>, vector<8x16xf32>
        %cst_38 = arith.constant dense<0.000000e+00> : vector<16xf32>
        %84 = vector.multi_reduction <add>, %83, %cst_38 [0] : vector<8x16xf32> to vector<16xf32>
        %85 = vector.shape_cast %84 : vector<16xf32> to vector<1x16xf32>
        %cst_39 = arith.constant 8.000000e+00 : f32
        %86 = vector.broadcast %cst_39 : f32 to vector<1x16xf32>
        %87 = arith.divf %85, %86 : vector<1x16xf32>
        %c0_40 = arith.constant 0 : index
        %c0_41 = arith.constant 0 : index
        %88 = vector.load %arg5[%c0_40, %c0_41] : memref<312x128xf32, #tpu.memory_space<vmem>>, vector<16x128xf32>
        %cst_42 = arith.constant dense<0.000000e+00> : vector<1x128xf32>
        %89 = tpu.matmul %87, %88, %cst_42 {dimension_numbers = #tpu.dot_dimension_numbers<[1], [0], [0], [1], [0, 0, 1, 1], [], []>} : vector<1x16xf32>, vector<16x128xf32>, vector<1x128xf32> -> vector<1x128xf32>
        %c176 = arith.constant 176 : index
        %c0_43 = arith.constant 0 : index
        %90 = vector.load %arg5[%c176, %c0_43] : memref<312x128xf32, #tpu.memory_space<vmem>>, vector<1x128xf32>
        %91 = arith.addf %89, %90 : vector<1x128xf32>
        %c0_44 = arith.constant 0 : index
        %c0_45 = arith.constant 0 : index
        %92 = vector.load %arg7[%c0_44, %c0_45] : memref<1x128xf32, #tpu.memory_space<vmem>>, vector<1x128xf32>
        tpu.vector_store %arg7[%c0_44, %c0_45], %91 {strides = array<i32>} : memref<1x128xf32, #tpu.memory_space<vmem>>, vector<1x128xf32>,
      } else {
      }
      %c0_33 = arith.constant 0 : index
      %79 = memref.load %arg1[%c0_33] : memref<9xi32, #tpu.memory_space<smem>>
      %c0_i32_34 = arith.constant 0 : i32
      %80 = arith.cmpi ne, %79, %c0_i32_34 : i32
      %81 = arith.extui %80 : i1 to i32
      %c0_i32_35 = arith.constant 0 : i32
      %82 = arith.cmpi ne, %81, %c0_i32_35 : i32
      scf.if %82 {
        %c8 = arith.constant 8 : index
        %c0_36 = arith.constant 0 : index
        %83 = vector.load %arg3[%c8, %c0_36] : memref<16x128xf32, #tpu.memory_space<vmem>>, vector<1x128xf32>
        %c0_37 = arith.constant 0 : index
        %c0_38 = arith.constant 0 : index
        %84 = vector.load %arg7[%c0_37, %c0_38] : memref<1x128xf32, #tpu.memory_space<vmem>>, vector<1x128xf32>
        tpu.vector_store %arg7[%c0_37, %c0_38], %83 {strides = array<i32>} : memref<1x128xf32, #tpu.memory_space<vmem>>, vector<1x128xf32>,
      } else {
      }
    } else {
    }
    %c0 = arith.constant 0 : index
    %c0_1 = arith.constant 0 : index
    %3 = vector.load %arg7[%c0, %c0_1] : memref<1x128xf32, #tpu.memory_space<vmem>>, vector<1x128xf32>
    %c2_i32 = arith.constant 2 : i32
    %4 = arith.muli %c2_i32, %arg0 : i32
    %c1_i32 = arith.constant 1 : i32
    %5 = arith.addi %c1_i32, %4 : i32
    %6 = arith.index_cast %5 : i32 to index
    %7 = memref.load %arg1[%6] : memref<9xi32, #tpu.memory_space<smem>>
    %c0_i32_2 = arith.constant 0 : i32
    %c5_i32 = arith.constant 5 : i32
    %8 = arith.maxsi %c0_i32_2, %7 : i32
    %9 = arith.minsi %c5_i32, %8 : i32
    %c2_i32_3 = arith.constant 2 : i32
    %10 = arith.muli %c2_i32_3, %arg0 : i32
    %c2_i32_4 = arith.constant 2 : i32
    %11 = arith.addi %c2_i32_4, %10 : i32
    %12 = arith.index_cast %11 : i32 to index
    %13 = memref.load %arg1[%12] : memref<9xi32, #tpu.memory_space<smem>>
    %c0_i32_5 = arith.constant 0 : i32
    %c20_i32 = arith.constant 20 : i32
    %14 = arith.maxsi %c0_i32_5, %13 : i32
    %15 = arith.minsi %c20_i32, %14 : i32
    %c21_i32 = arith.constant 21 : i32
    %16 = arith.muli %9, %c21_i32 : i32
    %c184_i32 = arith.constant 184 : i32
    %17 = arith.addi %c184_i32, %16 : i32
    %18 = arith.addi %17, %15 : i32
    %19 = arith.index_cast %18 : i32 to index
    %c0_6 = arith.constant 0 : index
    %20 = vector.load %arg5[%19, %c0_6] : memref<312x128xf32, #tpu.memory_space<vmem>>, vector<1x64xf32>
    %c0_7 = arith.constant 0 : index
    %c0_8 = arith.constant 0 : index
    %21 = vector.load %arg2[%c0_7, %c0_8] : memref<8x768xf32, #tpu.memory_space<vmem>>, vector<1x768xf32>
    %c0_9 = arith.constant 0 : index
    %c0_10 = arith.constant 0 : index
    %22 = vector.load %arg4[%c0_9, %c0_10] : memref<64x768xf32, #tpu.memory_space<vmem>>, vector<64x768xf32>
    %cst = arith.constant dense<0.000000e+00> : vector<1x64xf32>
    %23 = tpu.matmul %21, %22, %cst {dimension_numbers = #tpu.dot_dimension_numbers<[1], [1], [0], [0], [0, 0, 1, 0], [], []>} : vector<1x768xf32>, vector<64x768xf32>, vector<1x64xf32> -> vector<1x64xf32>
    %24 = vector.extract_strided_slice %3 {offsets = [0, 0], sizes = [1, 64], strides = [1, 1]} : vector<1x128xf32> to vector<1x64xf32>
    %25 = arith.addf %23, %24 : vector<1x64xf32>
    %c16 = arith.constant 16 : index
    %c0_11 = arith.constant 0 : index
    %26 = vector.load %arg5[%c16, %c0_11] : memref<312x128xf32, #tpu.memory_space<vmem>>, vector<64x64xf32>
    %cst_12 = arith.constant dense<0.000000e+00> : vector<1x64xf32>
    %27 = tpu.matmul %25, %26, %cst_12 {dimension_numbers = #tpu.dot_dimension_numbers<[1], [0], [0], [1], [0, 0, 1, 1], [], []>} : vector<1x64xf32>, vector<64x64xf32>, vector<1x64xf32> -> vector<1x64xf32>
    %28 = arith.addf %27, %20 : vector<1x64xf32>
    %cst_13 = arith.constant 0.000000e+00 : f32
    %29 = vector.broadcast %cst_13 : f32 to vector<1x64xf32>
    %30 = arith.maximumf %28, %29 : vector<1x64xf32>
    %c80 = arith.constant 80 : index
    %c0_14 = arith.constant 0 : index
    %31 = vector.load %arg5[%c80, %c0_14] : memref<312x128xf32, #tpu.memory_space<vmem>>, vector<64x32xf32>
    %cst_15 = arith.constant dense<0.000000e+00> : vector<1x32xf32>
    %32 = tpu.matmul %30, %31, %cst_15 {dimension_numbers = #tpu.dot_dimension_numbers<[1], [0], [0], [1], [0, 0, 1, 1], [], []>} : vector<1x64xf32>, vector<64x32xf32>, vector<1x32xf32> -> vector<1x32xf32>
    %c177 = arith.constant 177 : index
    %c0_16 = arith.constant 0 : index
    %33 = vector.load %arg5[%c177, %c0_16] : memref<312x128xf32, #tpu.memory_space<vmem>>, vector<1x32xf32>
    %34 = arith.addf %32, %33 : vector<1x32xf32>
    %35 = tpu.iota {dimensions = array<i32: 1>} : vector<1x32xi32>
    %c20_i32_17 = arith.constant 20 : i32
    %36 = vector.broadcast %c20_i32_17 : i32 to vector<1x32xi32>
    %37 = arith.cmpi slt, %35, %36 : vector<1x32xi32>
    %c20_i32_18 = arith.constant 20 : i32
    %38 = vector.broadcast %c20_i32_18 : i32 to vector<1x32xi32>
    %39 = arith.cmpi sge, %35, %38 : vector<1x32xi32>
    %c25_i32 = arith.constant 25 : i32
    %40 = vector.broadcast %c25_i32 : i32 to vector<1x32xi32>
    %41 = arith.cmpi slt, %35, %40 : vector<1x32xi32>
    %42 = arith.andi %39, %41 : vector<1x32xi1>
    %cst_19 = arith.constant -1.000000e+30 : f32
    %43 = vector.broadcast %cst_19 : f32 to vector<1x32xf32>
    %44 = arith.select %37, %34, %43 : vector<1x32xi1>, vector<1x32xf32>
    %cst_20 = arith.constant -1.000000e+30 : f32
    %45 = vector.broadcast %cst_20 : f32 to vector<1x32xf32>
    %46 = arith.select %42, %34, %45 : vector<1x32xi1>, vector<1x32xf32>
    %cst_21 = arith.constant dense<0xFF800000> : vector<1xf32>
    %47 = vector.multi_reduction <maximumf>, %44, %cst_21 [1] : vector<1x32xf32> to vector<1xf32>
    %48 = vector.shape_cast %47 : vector<1xf32> to vector<1x1xf32>
    %cst_22 = arith.constant dense<0xFF800000> : vector<1xf32>
    %49 = vector.multi_reduction <maximumf>, %46, %cst_22 [1] : vector<1x32xf32> to vector<1xf32>
    %50 = vector.shape_cast %49 : vector<1xf32> to vector<1x1xf32>
    %51 = vector.broadcast %48 : vector<1x1xf32> to vector<1x32xf32>
    %52 = arith.subf %44, %51 : vector<1x32xf32>
    %53 = math.exp %52 : vector<1x32xf32>
    %cst_23 = arith.constant dense<0.000000e+00> : vector<1xf32>
    %54 = vector.multi_reduction <add>, %53, %cst_23 [1] : vector<1x32xf32> to vector<1xf32>
    %55 = vector.shape_cast %54 : vector<1xf32> to vector<1x1xf32>
    %56 = math.log %55 : vector<1x1xf32>
    %57 = arith.addf %48, %56 : vector<1x1xf32>
    %58 = vector.broadcast %50 : vector<1x1xf32> to vector<1x32xf32>
    %59 = arith.subf %46, %58 : vector<1x32xf32>
    %60 = math.exp %59 : vector<1x32xf32>
    %cst_24 = arith.constant dense<0.000000e+00> : vector<1xf32>
    %61 = vector.multi_reduction <add>, %60, %cst_24 [1] : vector<1x32xf32> to vector<1xf32>
    %62 = vector.shape_cast %61 : vector<1xf32> to vector<1x1xf32>
    %63 = math.log %62 : vector<1x1xf32>
    %64 = arith.addf %50, %63 : vector<1x1xf32>
    %65 = vector.shape_cast %57 : vector<1x1xf32> to vector<1x1xf32>
    %66 = vector.broadcast %65 : vector<1x1xf32> to vector<1x32xf32>
    %67 = vector.shape_cast %64 : vector<1x1xf32> to vector<1x1xf32>
    %68 = vector.broadcast %67 : vector<1x1xf32> to vector<1x32xf32>
    %69 = arith.select %37, %66, %68 : vector<1x32xi1>, vector<1x32xf32>
    %70 = arith.subf %34, %69 : vector<1x32xf32>
    %c144 = arith.constant 144 : index
    %c0_25 = arith.constant 0 : index
    %71 = vector.load %arg5[%c144, %c0_25] : memref<312x128xf32, #tpu.memory_space<vmem>>, vector<32x128xf32>
    %cst_26 = arith.constant dense<0.000000e+00> : vector<1x128xf32>
    %72 = tpu.matmul %70, %71, %cst_26 {dimension_numbers = #tpu.dot_dimension_numbers<[1], [0], [0], [1], [0, 0, 1, 1], [], []>} : vector<1x32xf32>, vector<32x128xf32>, vector<1x128xf32> -> vector<1x128xf32>
    %c0_27 = arith.constant 0 : index
    %c0_28 = arith.constant 0 : index
    %73 = vector.load %arg6[%c0_27, %c0_28] : memref<8x128xf32, #tpu.memory_space<vmem>>, vector<1x128xf32>
    tpu.vector_store %arg6[%c0_27, %c0_28], %72 {strides = array<i32>} : memref<8x128xf32, #tpu.memory_space<vmem>>, vector<1x128xf32>,
    %c1 = arith.constant 1 : index
    %c0_29 = arith.constant 0 : index
    %74 = vector.load %arg6[%c1, %c0_29] : memref<8x128xf32, #tpu.memory_space<vmem>>, vector<1x128xf32>
    tpu.vector_store %arg6[%c1, %c0_29], %3 {strides = array<i32>} : memref<8x128xf32, #tpu.memory_space<vmem>>, vector<1x128xf32>,
    return
  }
  func.func @transform_0(%arg0: i32, %arg1: memref<9xi32, #tpu.memory_space<smem>>) -> (i32, i32) {
    %c0_i32 = arith.constant 0 : i32
    %c0_i32_0 = arith.constant 0 : i32
    return %arg0, %c0_i32 : i32, i32
  }
  func.func @transform_1(%arg0: i32, %arg1: memref<9xi32, #tpu.memory_space<smem>>) -> (i32, i32) {
    %c0_i32 = arith.constant 0 : i32
    %c0_i32_0 = arith.constant 0 : i32
    %c0_i32_1 = arith.constant 0 : i32
    return %c0_i32, %c0_i32_0 : i32, i32
  }
  func.func @transform_2(%arg0: i32, %arg1: memref<9xi32, #tpu.memory_space<smem>>) -> (i32, i32) {
    %c0_i32 = arith.constant 0 : i32
    %c0_i32_0 = arith.constant 0 : i32
    %c0_i32_1 = arith.constant 0 : i32
    return %c0_i32, %c0_i32_0 : i32, i32
  }
  func.func @transform_3(%arg0: i32, %arg1: memref<9xi32, #tpu.memory_space<smem>>) -> (i32, i32) {
    %c0_i32 = arith.constant 0 : i32
    %c0_i32_0 = arith.constant 0 : i32
    %c0_i32_1 = arith.constant 0 : i32
    return %c0_i32, %c0_i32_0 : i32, i32
  }
  func.func @transform_4(%arg0: i32, %arg1: memref<9xi32, #tpu.memory_space<smem>>) -> (i32, i32) {
    %c0_i32 = arith.constant 0 : i32
    %c0_i32_0 = arith.constant 0 : i32
    return %arg0, %c0_i32 : i32, i32
  }
}

</mosaic_0001>

<bundles_post_ra>
// kernel: _emnlp_steps.1
= control target key start
LH: loop header
LB: loop body
LE: loop exit
PB: predicated region body
PF: predicated region fallthrough
CT: control target
= control target key end

     0   :  { %s1509_s0 = inlined_call_operand.vmem [shape: s32[9], index: 0, kind: input, shape index: {}]   ;;  %s1510_s1 = inlined_call_operand.vmem [shape: f32[32,768], index: 1, kind: input, shape index: {}]   ;;  %s1511_s2 = inlined_call_operand.vmem [shape: f32[16,128], index: 2, kind: input, shape index: {}]   ;;  %s1512_s3 = inlined_call_operand.hbm [shape: f32[64,768], index: 3, kind: input, shape index: {}]   ;;  %s1513_s4 = inlined_call_operand.vmem [shape: f32[312,128], index: 4, kind: input, shape index: {}]   ;;  %s1514_s5 = inlined_call_operand.vmem [shape: f32[32,128], index: 5, kind: output, shape index: {}]  }
   0x1   :  { %s10_s20 = sshll.u32 %s1509_s0, 4  ;;  %s11_s20 = int_to_ptr.vmem [resolvable:$true] %s10_s20 }
   0x2   :  { %s1220_s21 = scalar_lea.vmem %s11_s20, 16  ;;  %p1225_p1 = scmp.lt.s32.totalorder %s11_s20, %s11_s20 }
   0x3   :  { %p1221_p0 = scmp.ne.s32.totalorder %s11_s20, %s1220_s21  ;;  %p1226_p2 = scmp.lt.s32.totalorder %s1220_s21, %s1220_s21 }
   0x5   :  { %p1227_p3 = por %p1226_p2, %p1225_p1 }
   0x7   :  { %p1228_p4 = pnand %p1227_p3, %p1221_p0 }
   0x9   :  { %1231 = shalt.err (!%p1228_p4)  }
   0xa   :  { %s1274_s22 = smov [#allocation4]  }
   0xb   :  { %13 = dma.vmem_to_smem %s11_s20, 16, %s1274_s22, [#allocation3] }
   0xc   :  { %1264 = dma.done.wait [#allocation3], 16 }
   0xd   :  { %1265 = vsyncadd [#allocation3], 4294967280 }
   0xe   :  { %15 = sfence }
   0xf   :  { %16 = vsyncpa [#allocation6], 0  ;;  %s1317_s23 = smov 0  }
  0x10 LB: > { %s1323_s0 = sadd.s32 4294967295, %s1272_s23   ;;  %p984_p5 = scmp.ge.s32.totalorder %s1272_s23, 1  ;;  %s1272_s23 = sphi %s1317_s23, %s22_s23  }
  0x11   : > { %p142_p6 = scmp.lt.s32.totalorder %s1272_s23, 5  ;;  %s1275_s24 = smov [#allocation5]  }
  0x12   : > { %s157_s25 = sshll.u32 %s1275_s24, 4  ;;  %p1515_p9 = scmp.eq.s32.totalorder %s1323_s0, 0  ;;  %s158_s25 = int_to_ptr.vmem [resolvable:$true] %s157_s25 }
  0x13   : > { %p1328_p8 = pnand %p984_p5, %p142_p6  ;;  %s1232_s30 = scalar_lea.hbm %s1512_s3, 6144 }
  0x14   : > { %p1233_p12 = scmp.ne.s32.totalorder %s1512_s3, %s1232_s30  ;;  %p1239_p2 = scmp.lt.u32.totalorder %s1232_s30, %s1512_s3 }
  0x15   : > { %s1517_s26 = scalar_select %p1328_p8, 1, 0 }
  0x16   : > { %p1188_p10 = pneg %p1328_p8 }
  0x18   : > { %p1337_p11 = pnand %p1515_p9, %p1188_p10 }
  0x1a   : > { %p1234_p13 = pneg %p1337_p11 }
  0x1c   : > { %p1235_p0 = pnand %p1234_p13, %p1233_p12 }
  0x1e   : > { %p1236_p1 = pneg %p1235_p0 }
  0x20   : > { %p1241_p3 = pnand %p1239_p2, %p1236_p1 }
  0x22   : > { %1244 = shalt.err (!%p1241_p3)
}
  0x23   : > { %s1245_s10 = scalar_lea.vmem %s158_s25, 6144  ;;  %p1253_p10 = scmp.lt.s32.totalorder %s158_s25, %s158_s25 }
  0x24   : > { %p1246_p4 = scmp.ne.s32.totalorder %s158_s25, %s1245_s10  ;;  %p1254_p7 = scmp.lt.s32.totalorder %s1245_s10, %s1245_s10 }
  0x26   : > { %p1248_p5 = pnand %p1246_p4, %p1234_p13  ;;  %p1255_p9 = por %p1254_p7, %p1253_p10 }
  0x28   : > { %p1249_p6 = pneg %p1248_p5 }
  0x2a   : > { %p1256_p8 = pnand %p1255_p9, %p1249_p6 }
  0x2c   : > { %1259 = shalt.err (!%p1256_p8)
}
  0x2d   : > { %s1276_s11 = smov 768   ;;  %s1277_s12 = smov 48  }
  0x2e   : > { %1191 = dma.hbm_to_vmem [thread:$0]  (!%p1337_p11), %s1512_s3, 6144, %s158_s25, [#allocation6], %s1276_s11, %s1276_s11, %s1277_s12  }
  0x2f   : > { %p1519_p12 = scmp.ne.s32.totalorder %s1517_s26, 0 }
  0x30   : > { %p1520_p0 = scmp.eq.s32.totalorder (!%p1519_p12), %s1323_s0, 0 }
  0x31   : > { %184 = sbr.rel (%p1519_p12) target bundleno = 1562 (0x61a), region = 36 }
  0x38   : > { %1267 = dma.done.wait (%p1520_p0), [#allocation6], 6144   ;;  %p1521_p13 = pmov %p1520_p0 }
  0x39   : > { %p209_p7 = scmp.lt.s32.totalorder %s1323_s0, 3  ;;  %p1522_p8 = scmp.ne.s32.totalorder %s1323_s0, 0 }
  0x3a   : > { %1269 = vsyncadd (%p1521_p13), [#allocation6], 4294961152  ;;  %s222_s25 = sld [smem:[#allocation4]] (!%p1522_p8) }
  0x3b   : > { %s210_s15 = scalar_select %p209_p7, %s1323_s0, 3 }
  0x3c   : > { %221 = sbr.rel (%p1522_p8) target bundleno = 314 (0x13a), region = 44 }
  0x3d   : > { %s1183_s16 = smul.u32 48, %s210_s15  ;;  %s990_s17 = sshll.u32 %s210_s15, 3 }
  0x3e   : > { %s1368_s20 = scalar_lea.vmem %s1514_s5, %s990_s17 }
  0x3f   : > { %s1373_s24 = scalar_lea.vmem %s1510_s1, %s1183_s16 }
  0x40   : > { %p992_p9 = scmp.ne.s32.totalorder (!%p1522_p8), %s222_s25, 0 }
  0x43   : > { %226 = sbr.rel (%p992_p9) target bundleno = 299 (0x12b), region = 48  ;;  %v238_v0 = vld [vmem:[%s1513_s4] sm:$0xff] (!%p992_p9)  ;;  %v239_v1 = vld [vmem:[%s1513_s4 + $0x8] sm:$0xff] (!%p992_p9)  ;;  %v1278_v3 = vmov (!%p992_p9), 0.0|0.0   ;;  %vm1279_vm0 = vmmov (!%p992_p9), 0   ;;  %v1280_v5 = vmov (!%p992_p9), 0.0  }
  0x44   : > { %v227_v2 = vld [vmem:[%s1511_s2] sm:$0xff] (!%p992_p9)  ;;  %1098 = vmatprep.subr.bf16.mxu0 (!%p992_p9), %v1278_v3  ;;  %v1099_v4 = vpack.c.bf16 (!%p992_p9), %v239_v1, %v238_v0  ;;  %1046 = vmatprep.mubr.msk.f32.mxu0 (!%p992_p9), %vm1279_vm0, %v1280_v5  ;;  %vm228_vm1 = vcmask (!%p992_p9), 130048   ;;  %v240_v14 = vld [vmem:[%s1513_s4 + $0xb0] sm:$0x1] (!%p992_p9) }
  0x45   : > { %v229_v6 = vsel (!%p992_p9), %vm228_vm1, %v227_v2, 0.0 }
  0x46   : > { %1100 = vmatpush3.bf16.msra.mxu0 (!%p992_p9), %v1099_v4  ;;  %v230_v7 = vrot.slane (!%p992_p9), %v229_v6, 4 }
  0x48   : > { %v231_v8 = vadd.f32 (!%p992_p9), %v230_v7, %v229_v6 }
  0x4a   : > { %v232_v9 = vrot.slane %v231_v8, 2 }
  0x4c   : > { %v233_v10 = vadd.f32 %v232_v9, %v231_v8 }
  0x4e   : > { %v234_v11 = vrot.slane %v233_v10, 1 }
  0x50   : > { %v235_v12 = vadd.f32 %v234_v11, %v233_v10 }
  0x52   : > { %v237_v13 = vmul.f32 0.125, %v235_v12 }
  0x54   : > { %1047 = vmatmul.mubr.msk.f32.vlgmr.msra.gmra.mrb[0].mxu0 %vm228_vm1, %v237_v13 }
 0x127   : > { %v310_v15 = vpop.f32.mrb[0].mxu0 }
 0x128   : > { %v311_v16 = vadd.f32 %v310_v15, %v240_v14  ;;  %v1048_v17 = vpop.f32.mrb[1].mxu0 }
 0x12a   : > { %314 = vst [vmem:[#allocation2] sm:$0x1] %v311_v16 }
 0x12b PF: > { %s315_s9 = sld [smem:[#allocation4]] }
 0x131   : > { %p994_p11 = scmp.eq.s32.totalorder %s315_s9, 0 }
 0x132   : > { %v320_v18 = vld [vmem:[%s1511_s2 + $0x8] sm:$0x1] (!%p994_p11) }
 0x133   : > { %319 = sbr.rel (%p994_p11) target bundleno = 314 (0x13a), region = 52  ;;  %321 = vst [vmem:[#allocation2] sm:$0x1] (!%p994_p11), %v320_v18 }
 0x13a PF: > { %v347_v19 = vld [vmem:[#allocation5 + $0x18] sm:$0xff]  ;;  %v353_v20 = vld [vmem:[#allocation5 + $0x48] sm:$0xff]  ;;  %v346_v21 = vld [vmem:[#allocation5 + $0x10] sm:$0xff]  ;;  %v393_v22 = vlaneseq  ;;  %vm1282_vm2 = vmmov 0   ;;  %vm641_vm3 = vcmask 523264   ;;  %s995_s22 = sshll.u32 %s1323_s0, 1 }
 0x13b   : > { %v1117_v23 = vpack.c.bf16 %v353_v20, %v347_v19  ;;  %v352_v24 = vld [vmem:[#allocation5 + $0x40] sm:$0xff]  ;;  %v359_v25 = vld [vmem:[#allocation5 + $0x78] sm:$0xff]  ;;  %v365_v26 = vld [vmem:[#allocation5 + $0xa8] sm:$0xff]  ;;  %s330_s26 = sadd.s32 2, %s995_s22  ;;  %vm806_vm7 = vcmask 253952   ;;  %vm837_vm9 = vcmask 261120  }
 0x13c   : > { %v1119_v27 = vpack.c.bf16 %v352_v24, %v346_v21  ;;  %v1121_v28 = vpack.c.bf16 %v365_v26, %v359_v25  ;;  %v1393_v29 = vshrl.u32 %v393_v22, 7  ;;  %v358_v30 = vld [vmem:[#allocation5 + $0x70] sm:$0xff]  ;;  %v364_v31 = vld [vmem:[#allocation5 + $0xa0] sm:$0xff]  ;;  %v371_v32 = vld [vmem:[#allocation5 + $0xd8] sm:$0xff]  ;;  %s331_s27 = sld [smem:[#allocation4 + %s330_s26]] }
 0x13d   : > { %1118 = vmatprep.subr.bf16.mxu0 %v1117_v23  ;;  %v377_v33 = vld [vmem:[#allocation5 + $0x108] sm:$0xff]  ;;  %v351_v35 = vld [vmem:[#allocation5 + $0x38] sm:$0xff]  ;;  %v344_v37 = vld [vmem:[#allocation5] sm:$0xff]  ;;  %v1123_v44 = vpack.c.bf16 %v364_v31, %v358_v30 }
 0x13e   : > { %1120 = vmatpush1.bf16.xpose.msra.mxu0 %v1119_v27  ;;  %v345_v34 = vld [vmem:[#allocation5 + $0x8] sm:$0xff]  ;;  %v350_v38 = vld [vmem:[#allocation5 + $0x30] sm:$0xff]  ;;  %v407_v40 = vsub.s32 3, %v1393_v29  ;;  %v342_v42 = vld [vmem:[%s1373_s24] ss:$8 sm:$0x30]  ;;  %v1125_v47 = vpack.c.bf16 %v377_v33, %v371_v32 }
 0x13f   : > { %1122 = vmatprep.subr.bf16.mxu0 %v1121_v28  ;;  %v1101_v36 = vpack.c.bf16 %v351_v35, %v345_v34  ;;  %v341_v39 = vld [vmem:[%s1373_s24] ss:$8 sm:$0xf]  ;;  %v1103_v41 = vpack.c.bf16 %v350_v38, %v344_v37  ;;  %v399_v43 = vsub.s32 1, %v1393_v29  ;;  %v403_v15 = vsub.s32 2, %v1393_v29  ;;  %s324_s24 = sadd.s32 1, %s995_s22 }
 0x140   : > { %v1399_v45 = vor.u32 %v342_v42, %v341_v39  ;;  %v357_v46 = vld [vmem:[#allocation5 + $0x68] sm:$0xff]  ;;  %v363_v48 = vld [vmem:[#allocation5 + $0x98] sm:$0xff]  ;;  %v356_v51 = vld [vmem:[#allocation5 + $0x60] sm:$0xff]  ;;  %v415_v16 = vsub.s32 5, %v1393_v29  ;;  %v395_v25 = vsub.s32 0, %v1393_v29  ;;  %v1281_v28 = vmov 0.0|0.0  }
 0x141   : > { %1102 = vmatprep.subr.bf16.mxu1 %v1101_v36  ;;  %v1105_v50 = vpack.c.bf16 %v363_v48, %v357_v46  ;;  %v362_v52 = vld [vmem:[#allocation5 + $0x90] sm:$0xff]  ;;  %v369_v53 = vld [vmem:[#allocation5 + $0xc8] sm:$0xff]  ;;  %v375_v54 = vld [vmem:[#allocation5 + $0xf8] sm:$0xff]  ;;  %s325_s25 = sld [smem:[#allocation4 + %s324_s24]] }
 0x142   : > { %1104 = vmatpush1.bf16.xpose.msra.mxu1 %v1103_v41  ;;  %v408_v49 = vrot.slane %v1399_v45, %v407_v40  ;;  %v400_v55 = vrot.slane %v1399_v45, %v399_v43  ;;  %v370_v56 = vld [vmem:[#allocation5 + $0xd0] sm:$0xff]  ;;  %v376_v57 = vld [vmem:[#allocation5 + $0x100] sm:$0xff]  ;;  %v1107_v58 = vpack.c.bf16 %v362_v52, %v356_v51  ;;  %v383_v59 = vld [vmem:[#allocation5 + $0x138] sm:$0xff]  ;;  %v1109_v61 = vpack.c.bf16 %v375_v54, %v369_v53  ;;  %p332_p3 = scmp.gt.s32.totalorder %s331_s27, 0  ;;  %p1001_p4 = scmp.lt.s32.totalorder %s331_s27, 20 }
 0x143   : > { %1106 = vmatprep.subr.bf16.mxu1 %v1105_v50  ;;  %v389_v60 = vld [vmem:[#allocation5 + $0x168] sm:$0xff]  ;;  %v1127_v62 = vpack.c.bf16 %v376_v57, %v370_v56  ;;  %v368_v0 = vld [vmem:[#allocation5 + $0xc0] sm:$0xff]  ;;  %v374_v1 = vld [vmem:[#allocation5 + $0xf0] sm:$0xff]  ;;  %v404_v23 = vrot.slane %v1399_v45, %v403_v15  ;;  %v416_v26 = vrot.slane %v1399_v45, %v415_v16  ;;  %v396_v32 = vrot.slane %v1399_v45, %v395_v25 }
 0x144   : > { %557 = vmatprep.mubr.f32.mxu0 %v408_v49  ;;  %487 = vmatprep.mubr.f32.mxu1 %v400_v55  ;;  %v1129_v63 = vpack.c.bf16 %v389_v60, %v383_v59  ;;  %v1403_v2 = vld [vmem:[#allocation2] sm:$0x1]  ;;  %v381_v3 = vld [vmem:[#allocation5 + $0x128] sm:$0xff]  ;;  %v382_v5 = vld [vmem:[#allocation5 + $0x130] sm:$0xff]  ;;  %v1111_v7 = vpack.c.bf16 %v374_v1, %v368_v0  ;;  %v411_v56 = vsub.s32 4, %v1393_v29  ;;  %s1526_s27 = smov (!%p332_p3, %s331_s27), 0 }
 0x145   : > { %v387_v4 = vld [vmem:[#allocation5 + $0x158] sm:$0xff]  ;;  %912 = vst [vmem:[%s1368_s20 + $0x1] sm:$0x1] %v1403_v2  ;;  %v388_v6 = vld [vmem:[#allocation5 + $0x160] sm:$0xff]  ;;  %v349_v8 = vld [vmem:[#allocation5 + $0x28] sm:$0xff]  ;;  %s1530_s27 = smov (!%p1001_p4, %s1526_s27), 20 }
 0x146   : > { %1124 = vmatpush1.bf16.xpose.msra.mxu0 %v1123_v44  ;;  %v355_v9 = vld [vmem:[#allocation5 + $0x58] sm:$0xff]  ;;  %v1113_v10 = vpack.c.bf16 %v387_v4, %v381_v3  ;;  %v1131_v11 = vpack.c.bf16 %v388_v6, %v382_v5  ;;  %v380_v13 = vld [vmem:[#allocation5 + $0x120] sm:$0xff]  ;;  %v386_v14 = vld [vmem:[#allocation5 + $0x150] sm:$0xff]  ;;  %v412_v57 = vrot.slane %v1399_v45, %v411_v56 }
 0x147   : > { %1126 = vmatprep.subr.bf16.mxu0 %v1125_v47  ;;  %v1133_v12 = vpack.c.bf16 %v355_v9, %v349_v8  ;;  %v348_v17 = vld [vmem:[#allocation5 + $0x20] sm:$0xff]  ;;  %v354_v18 = vld [vmem:[#allocation5 + $0x50] sm:$0xff]  ;;  %v1115_v19 = vpack.c.bf16 %v386_v14, %v380_v13  ;;  %v361_v20 = vld [vmem:[#allocation5 + $0x88] sm:$0xff]  ;;  %p326_p1 = scmp.gt.s32.totalorder %s325_s25, 0  ;;  %p996_p2 = scmp.lt.s32.totalorder %s325_s25, 5 }
 0x148   : > { %v367_v21 = vld [vmem:[#allocation5 + $0xb8] sm:$0xff]  ;;  %v1135_v24 = vpack.c.bf16 %v354_v18, %v348_v17  ;;  %v633_v30 = vld [vmem:[%s1513_s4 + $0x10] sm:$0xff]  ;;  %v360_v33 = vld [vmem:[#allocation5 + $0x80] sm:$0xff] }
 0x149   : > { %v1137_v27 = vpack.c.bf16 %v367_v21, %v361_v20  ;;  %v634_v31 = vld [vmem:[%s1513_s4 + $0x18] sm:$0xff]  ;;  %v373_v35 = vld [vmem:[#allocation5 + $0xe8] sm:$0xff]  ;;  %v635_v38 = vld [vmem:[%s1513_s4 + $0x20] sm:$0xff]  ;;  %s1524_s25 = smov (!%p326_p1, %s325_s25), 0 }
 0x14a   : > { %1108 = vmatpush1.bf16.xpose.msra.mxu1 %v1107_v58  ;;  %v366_v34 = vld [vmem:[#allocation5 + $0xb0] sm:$0xff]  ;;  %v1150_v36 = vpack.c.bf16 %v634_v31, %v633_v30  ;;  %v379_v37 = vld [vmem:[#allocation5 + $0x118] sm:$0xff]  ;;  %v636_v39 = vld [vmem:[%s1513_s4 + $0x28] sm:$0xff]  ;;  %s1528_s25 = smov (!%p996_p2, %s1524_s25), 5 }
 0x14b   : > { %1110 = vmatprep.subr.bf16.mxu1 %v1109_v61  ;;  %v1139_v40 = vpack.c.bf16 %v366_v34, %v360_v33  ;;  %v1141_v41 = vpack.c.bf16 %v379_v37, %v373_v35  ;;  %v1153_v42 = vpack.c.bf16 %v636_v39, %v635_v38  ;;  %v637_v43 = vld [vmem:[%s1513_s4 + $0x30] sm:$0xff]  ;;  %v638_v44 = vld [vmem:[%s1513_s4 + $0x38] sm:$0xff]  ;;  %v372_v46 = vld [vmem:[#allocation5 + $0xe0] sm:$0xff]  ;;  %v1283_v61 = vmov 0.0   ;;  %s945_s28 = smul.u32 21, %s1528_s25 }
 0x14c   : > { %v378_v47 = vld [vmem:[#allocation5 + $0x110] sm:$0xff]  ;;  %v1156_v48 = vpack.c.bf16 %v638_v44, %v637_v43  ;;  %v385_v49 = vld [vmem:[#allocation5 + $0x148] sm:$0xff]  ;;  %v391_v50 = vld [vmem:[#allocation5 + $0x178] sm:$0xff] }
 0x14d   : > { %v1143_v51 = vpack.c.bf16 %v378_v47, %v372_v46  ;;  %v1145_v52 = vpack.c.bf16 %v391_v50, %v385_v49  ;;  %v384_v53 = vld [vmem:[#allocation5 + $0x140] sm:$0xff]  ;;  %v390_v54 = vld [vmem:[#allocation5 + $0x170] sm:$0xff]  ;;  %s946_s29 = sadd.s32 %s1530_s27, %s945_s28 }
 0x14e   : > { %1128 = vmatpush1.bf16.xpose.msra.mxu0 %v1127_v62  ;;  %v1147_v55 = vpack.c.bf16 %v390_v54, %v384_v53  ;;  %v639_v58 = vld [vmem:[%s1513_s4 + $0x40] sm:$0xff]  ;;  %v640_v59 = vld [vmem:[%s1513_s4 + $0x48] sm:$0xff]  ;;  %v717_v0 = vld [vmem:[%s1513_s4 + $0x58] sm:$0xff]  ;;  %s947_s7 = scalar_lea.vmem %s1513_s4, %s946_s29 }
 0x14f   : > { %1130 = vmatprep.subr.bf16.mxu0 %v1129_v63  ;;  %v1159_v60 = vpack.c.bf16 %v640_v59, %v639_v58  ;;  %v716_v63 = vld [vmem:[%s1513_s4 + $0x50] sm:$0xff]  ;;  %v718_v6 = vld [vmem:[%s1513_s4 + $0x60] sm:$0xff]  ;;  %v721_v9 = vld [vmem:[%s1513_s4 + $0x78] sm:$0xff] }
 0x150   : > { %v1162_v3 = vpack.c.bf16 %v717_v0, %v716_v63  ;;  %v720_v8 = vld [vmem:[%s1513_s4 + $0x70] sm:$0xff]  ;;  %v1006_v14 = vld [vmem:[%s947_s7 + $0xb8] sm:$0x1]  ;;  %v835_v43 = vld [vmem:[%s1513_s4 + $0xa0] sm:$0xff] }
 0x151   : > { %v724_v20 = vld [vmem:[%s1513_s4 + $0xb1] sm:$0x1]  ;;  %v836_v44 = vld [vmem:[%s1513_s4 + $0xa8] sm:$0xff] }
 0x152   : > { %1112 = vmatpush1.bf16.xpose.msra.mxu1 %v1111_v7  ;;  %v1177_v46 = vpack.c.bf16 %v836_v44, %v835_v43 }
 0x153   : > { %1114 = vmatprep.subr.bf16.mxu1 %v1113_v10  ;;  %v1168_v10 = vpack.c.bf16 %v721_v9, %v720_v8 }
 0x156   : > { %1132 = vmatpush1.bf16.xpose.msra.mxu0 %v1131_v11  ;;  %v722_v11 = vld [vmem:[%s1513_s4 + $0x80] sm:$0xff] }
 0x157   : > { %1134 = vmatprep.subr.bf16.mxu0 %v1133_v12  ;;  %v723_v12 = vld [vmem:[%s1513_s4 + $0x88] sm:$0xff] }
 0x158   : > { %v1171_v13 = vpack.c.bf16 %v723_v12, %v722_v11 }
 0x15a   : > { %1116 = vmatpush1.bf16.xpose.msra.mxu1 %v1115_v19  ;;  %v799_v19 = vand.u32 127, %v393_v22 }
 0x15b   : > { %1149 = vmatprep.subr.bf16.mxu1 %v1281_v28 }
 0x15c   : > { %vm801_vm4 = vcmp.ge.s32.totalorder %v799_v19, 20  ;;  %vm802_vm5 = vcmp.lt.s32.totalorder %v799_v19, 25  ;;  %vm800_vm6 = vcmp.lt.s32.totalorder %v799_v19, 20 }
 0x15d   : > { %558 = vmatmul.mubr.f32.vlgmr.msra.gmra.mrb[0].mxu0 %v404_v23  ;;  %vm803_vm8 = vmand %vm801_vm4, %vm802_vm5 }
 0x15e   : > { %1136 = vmatpush1.bf16.xpose.msra.mxu0 %v1135_v24  ;;  %627 = vmatprep.mubr.f32.mxu0 %v416_v26 }
 0x15f   : > { %1138 = vmatprep.subr.bf16.mxu0 %v1137_v27 }
 0x161   : > { %488 = vmatmul.mubr.f32.vlgmr.msra.gmra.mrb[0].mxu1 %v396_v32 }
 0x162   : > { %1151 = vmatpush3.bf16.msra.mxu1 %v1150_v36  ;;  %1065 = vmatprep.mubr.msk.f32.mxu1 %vm1282_vm2, %v1283_v61 }
 0x163   : > { %1152 = vmatprep.subr.bf16.mxu1 %v1281_v28 }
 0x166   : > { %1140 = vmatpush1.bf16.xpose.msra.mxu0 %v1139_v40  ;;  %1154 = vmatpush3.bf16.msra.mxu1 %v1153_v42  ;;  %v833_v40 = vld [vmem:[%s1513_s4 + $0x90] sm:$0xff] }
 0x167   : > { %1142 = vmatprep.subr.bf16.mxu0 %v1141_v41  ;;  %1155 = vmatprep.subr.bf16.mxu1 %v1281_v28  ;;  %v834_v41 = vld [vmem:[%s1513_s4 + $0x98] sm:$0xff] }
 0x168   : > { %v1174_v42 = vpack.c.bf16 %v834_v41, %v833_v40 }
 0x16a   : > { %1157 = vmatpush3.bf16.msra.mxu1 %v1156_v48 }
 0x16b   : > { %1158 = vmatprep.subr.bf16.mxu1 %v1281_v28 }
 0x16e   : > { %1144 = vmatpush1.bf16.xpose.msra.mxu0 %v1143_v51  ;;  %1160 = vmatpush3.bf16.msra.mxu1 %v1159_v60 }
 0x16f   : > { %1146 = vmatprep.subr.bf16.mxu0 %v1145_v52  ;;  %1161 = vmatprep.subr.bf16.mxu1 %v1281_v28 }
 0x176   : > { %1148 = vmatpush1.bf16.xpose.msra.mxu0 %v1147_v55 }
 0x17d   : > { %628 = vmatmul.mubr.f32.vlgmr.msra.gmra.mrb[0].mxu0 %v412_v57 }
 0x234   : > { %v489_v29 = vpop.f32.mrb[0].mxu1 }
 0x235   : > { %v491_v62 = vpop.f32.mrb[1].mxu1  ;;  %v490_v45 = vadd.f32 %v489_v29, %v1403_v2  ;;  %v719_v2 = vld [vmem:[%s1513_s4 + $0x68] sm:$0xff] }
 0x236   : > { %v1165_v7 = vpack.c.bf16 %v719_v2, %v718_v6 }
 0x250   : > { %v629_v1 = vpop.f32.mrb[0].mxu0 }
 0x251   : > { %v1180_v4 = vadd.f32 %v629_v1, %v490_v45  ;;  %v631_v5 = vpop.f32.mrb[1].mxu0 }
 0x253   : > { %1066 = vmatmul.mubr.msk.f32.vlgmr.msra.gmra.mrb[2].mxu1 %vm641_vm3, %v1180_v4 }
 0x254   : > { %1163 = vmatpush3.bf16.msra.mxu1 %v1162_v3  ;;  %1084 = vmatprep.mubr.msk.f32.mxu1 %vm1282_vm2, %v1283_v61 }
 0x255   : > { %1164 = vmatprep.subr.bf16.mxu1 %v1281_v28 }
 0x258   : > { %1166 = vmatpush3.bf16.msra.mxu1 %v1165_v7 }
 0x259   : > { %1167 = vmatprep.subr.bf16.mxu1 %v1281_v28 }
 0x25c   : > { %1169 = vmatpush3.bf16.msra.mxu1 %v1168_v10 }
 0x25d   : > { %1170 = vmatprep.subr.bf16.mxu1 %v1281_v28 }
 0x260   : > { %1172 = vmatpush3.bf16.msra.mxu1 %v1171_v13 }
 0x261   : > { %1173 = vmatprep.subr.bf16.mxu1 %v1281_v28 }
 0x326   : > { %v711_v15 = vpop.f32.mrb[2].mxu1 }
 0x327   : > { %v712_v16 = vadd.f32 %v1006_v14, %v711_v15  ;;  %v1067_v17 = vpop.f32.mrb[3].mxu1 }
 0x329   : > { %v715_v18 = vmax.f32 %v712_v16, 0.0 }
 0x32b   : > { %1085 = vmatmul.mubr.msk.f32.vlgmr.msra.gmra.mrb[4].mxu1 %vm641_vm3, %v715_v18 }
 0x32c   : > { %1095 = vmatprep.mubr.msk.f32.mxu1 %vm1282_vm2, %v1283_v61  ;;  %1175 = vmatpush3.bf16.msra.mxu1 %v1174_v42 }
 0x32d   : > { %1176 = vmatprep.subr.bf16.mxu1 %v1281_v28 }
 0x330   : > { %1178 = vmatpush3.bf16.msra.mxu1 %v1177_v46 }
 0x3fe   : > { %v794_v21 = vpop.f32.mrb[4].mxu1 }
 0x3ff   : > { %v795_v23 = vadd.f32 %v794_v21, %v724_v20  ;;  %v1086_v24 = vpop.f32.mrb[5].mxu1 }
 0x401   : > { %v804_v25 = vsel %vm800_vm6, %v795_v23, -1e+30  ;;  %v805_v27 = vsel %vm803_vm8, %v795_v23, -1e+30 }
 0x402   : > { %v807_v26 = vsel %vm806_vm7, %v804_v25, -inf  ;;  %v810_v22 = vsel %vm806_vm7, %v805_v27, -inf }
 0x403   : > { %808 = vmax.xlane.f32.xlu0 %v807_v26 }
 0x407   : > { %811 = vmax.xlane.f32.xlu0 %v810_v22 }
 0x490   : > { %v809_v30 = vpop.xlane.xlu0 %808 }
 0x491   : > { %v813_v31 = vsub.f32 %v804_v25, %v809_v30 }
 0x493   : > { %v814_v32 = vmul.f32 1.442695, %v813_v31 }
 0x494   : > { %v812_v33 = vpop.xlane.xlu0 %811 }
 0x495   : > { %1212 = vpow2.f32 %v814_v32  ;;  %v822_v34 = vsub.f32 %v805_v27, %v812_v33 }
 0x497   : > { %v823_v35 = vmul.f32 1.442695, %v822_v34 }
 0x499   : > { %1214 = vpow2.f32 %v823_v35 }
 0x49f   : > { %v1213_v36 = vpop.eup %1212 }
 0x4a0   : > { %v816_v37 = vsel %vm806_vm7, %v1213_v36, 0.0 }
 0x4a1   : > { %817 = vadd.xlane.f32.xlu1 %v816_v37 }
 0x4a3   : > { %v1215_v38 = vpop.eup %1214 }
 0x4a4   : > { %v825_v39 = vsel %vm806_vm7, %v1215_v38, 0.0 }
 0x4a5   : > { %826 = vadd.xlane.f32.xlu1 %v825_v39 }
 0x52e   : > { %v818_v47 = vpop.xlane.xlu1 %817 }
 0x52f   : > { %1216 = vlog2.f32 %v818_v47 }
 0x532   : > { %v827_v48 = vpop.xlane.xlu1 %826 }
 0x533   : > { %1218 = vlog2.f32 %v827_v48 }
 0x539   : > { %v1217_v49 = vpop.eup %1216 }
 0x53a   : > { %v820_v50 = vmul.f32 0.6931472, %v1217_v49 }
 0x53c   : > { %v821_v28 = vadd.f32 %v820_v50, %v809_v30 }
 0x53d   : > { %v1219_v51 = vpop.eup %1218 }
 0x53e   : > { %v829_v52 = vmul.f32 0.6931472, %v1219_v51 }
 0x540   : > { %v830_v53 = vadd.f32 %v829_v52, %v812_v33 }
 0x542   : > { %v831_v54 = vsel %vm800_vm6, %v821_v28, %v830_v53 }
 0x543   : > { %v832_v55 = vsub.f32 %v795_v23, %v831_v54 }
 0x545   : > { %1096 = vmatmul.mubr.msk.f32.vlgmr.msra.gmra.mrb[6].mxu1 %vm837_vm9, %v832_v55 }
 0x618   : > { %v907_v56 = vpop.f32.mrb[6].mxu1 }
 0x619   : > { %911 = vst [vmem:[%s1368_s20] sm:$0x1] %v907_v56  ;;  %v1097_v57 = vpop.f32.mrb[7].mxu1 }
 0x61a PF: > { %s22_s23 = sadd.s32 1, %s1272_s23  }
 0x61b   : > { %p19_p5 = scmp.ge.s32.totalorder %s22_s23, 6  }
 0x61d   :  { %21 = sbr.rel (!%p19_p5) target bundleno = 16 (0x10), region = 84 }
 0x624   :  { %932 = vsyncpa [#allocation6], 1 }
 0x625   :  { %934 = vsyncpa [#allocation6 + $0x1], 1 }

</bundles_post_ra>
